<compile_context>
chip_gen: v6e
topology: v6e:2x2x1
jax: 0.10.0
libtpu: 0.0.40
codegen_flags: <defaults>
</compile_context>

<pallas_src>
import functools

import jax
import jax.numpy as jnp
from jax import lax
from jax.experimental import pallas as pl
from jax.experimental.pallas import tpu as pltpu

LANES = 128
SUBLANES = 8
# (4096, 128) f32 = 2 MiB per input per grid step; 2 inputs x 2 pipeline
# buffers = 8 MiB VMEM -> fits v5e's 16 MiB scoped default and sits near the
# HBM roofline on v6e/v7x for this streaming reduction.
BLOCK_ROWS = 4096


def _round_up(x, m):
    return (x + m - 1) // m * m


def _wsse_kernel(w_ref, p_ref, t_ref, out_ref, acc_ref,
                 *, bm, inv_count, n_valid_last, ragged):
    """out = weight * sum((p - t)^2) / n_elems, streamed over row blocks.

    Grid = (n_row_blocks,): sequential reduction into a vreg-shaped (8, 128)
    VMEM accumulator (VPU adds only); the single XLU reduce + weight/mean
    scaling run once at the last row block.
    """
    i = pl.program_id(0)
    nb = pl.num_programs(0)

    @pl.when(i == 0)
    def _init():
        acc_ref[...] = jnp.zeros_like(acc_ref)

    d = p_ref[...].astype(jnp.float32) - t_ref[...].astype(jnp.float32)
    sq = d * d  # (bm, LANES)

    def _vreg_sum(x):
        # (bm, 128) -> (bm/8, 8, 128) -> per-vreg VPU adds -> (8, 128).
        return jnp.sum(x.reshape(bm // SUBLANES, SUBLANES, LANES), axis=0)

    if ragged:
        @pl.when(i < nb - 1)
        def _accumulate_full_block():
            acc_ref[...] += _vreg_sum(sq)

        @pl.when(i == nb - 1)
        def _accumulate_ragged_block():
            # Rows past the array extent of the partial last block hold
            # unspecified data -> mask them (select is NaN/Inf safe).
            row = lax.broadcasted_iota(jnp.int32, (bm, LANES), 0)
            acc_ref[...] += _vreg_sum(jnp.where(row < n_valid_last, sq, 0.0))
    else:
        acc_ref[...] += _vreg_sum(sq)

    @pl.when(i == nb - 1)
    def _finalize():
        total = jnp.sum(acc_ref[...])          # single XLU reduce per call
        w = w_ref[0].astype(jnp.float32)       # weight read once, from SMEM
        err = total * w * inv_count
        out_ref[...] = jnp.broadcast_to(err, (SUBLANES, LANES))


def _flatten_lane_dense(x):
    """Flatten to a (rows, 128) lane-dense slab with rows % 8 == 0."""
    flat = x.reshape(-1)
    n = flat.shape[0]
    padded = _round_up(n, SUBLANES * LANES)
    if padded != n:
        # TODO(synk): this pad is a full copy; it only triggers when numel is
        # not a multiple of 8*128.  Zero padding contributes 0 to the SSE and
        # the mean still divides by the ORIGINAL element count.
        flat = jnp.pad(flat, (0, padded - n))
    return flat.reshape(padded // LANES, LANES)


def _weighted_mse(pred, target, weight_scalar):
    """err = mean(weight * (pred - target)^2) as one pallas_call.

    pred/target: same-shaped arrays; weight_scalar: (1,) float32.
    Streams both tensors from HBM exactly once (no intermediate copies).
    """
    n_elems = pred.size
    p2 = _flatten_lane_dense(pred)
    t2 = _flatten_lane_dense(target)
    rows = p2.shape[0]                 # multiple of 8
    bm = min(BLOCK_ROWS, rows)         # rows % 8 == 0 -> bm % 8 == 0
    nb = pl.cdiv(rows, bm)
    n_valid_last = rows - (nb - 1) * bm
    ragged = (rows % bm) != 0

    kernel = functools.partial(
        _wsse_kernel, bm=bm, inv_count=1.0 / float(n_elems),
        n_valid_last=n_valid_last, ragged=ragged)

    out = pl.pallas_call(
        kernel,
        out_shape=jax.ShapeDtypeStruct((SUBLANES, LANES), jnp.float32),
        grid_spec=pltpu.PrefetchScalarGridSpec(
            num_scalar_prefetch=0,
            grid=(nb,),
            in_specs=[
                pl.BlockSpec(memory_space=pltpu.SMEM),        # (1,) weight
                pl.BlockSpec((bm, LANES), lambda i: (i, 0)),  # pred rows
                pl.BlockSpec((bm, LANES), lambda i: (i, 0)),  # target rows
            ],
            out_specs=pl.BlockSpec((SUBLANES, LANES), lambda i: (0, 0)),
            scratch_shapes=[pltpu.VMEM((SUBLANES, LANES), jnp.float32)],
        ),
        compiler_params=pltpu.CompilerParams(
            dimension_semantics=("arbitrary",),  # row axis is a reduction
        ),
    )(weight_scalar, p2, t2)
    return out[0, 0]


def base_loss_forward(preds, targets, weight=None):
    """JAX/Pallas equivalent of BaseLoss.forward (L2-style _forward)."""
    if isinstance(preds, (list, tuple)):
        n = len(preds)
        if weight is None:
            weight = jnp.ones((n,), dtype=jnp.float32)
        weight = jnp.asarray(weight, dtype=jnp.float32).reshape(-1)
        if weight.size < n:
            weight = jnp.full((n,), weight[0], dtype=jnp.float32)
        weight = weight[:n]

        errs = jnp.stack([
            _weighted_mse(preds[k], targets[k], weight[k].reshape(1))
            for k in range(n)])
        return jnp.mean(errs)
    else:
        if weight is None:
            weight = jnp.ones((1,), dtype=jnp.float32)
        w = jnp.asarray(weight, dtype=jnp.float32).reshape(-1)[:1]
        return _weighted_mse(preds, targets, w)


if __name__ == "__main__":
    key = jax.random.PRNGKey(0)
    k1, k2, k3, k4, k5, k6 = jax.random.split(key, 6)

    # NCHW-shaped inputs, as the PyTorch module would receive.
    shape = (2, 4, 16, 16)
    p0 = jax.random.normal(k1, shape, dtype=jnp.float32)
    t0 = jax.random.normal(k2, shape, dtype=jnp.float32)
    p1 = jax.random.normal(k3, shape, dtype=jnp.float32)
    t1 = jax.random.normal(k4, shape, dtype=jnp.float32)

    # 1) List case, default weight (ones).
    err_list = jax.block_until_ready(base_loss_forward([p0, p1], [t0, t1]))
    ref_list = jnp.mean(jnp.stack([jnp.mean((p0 - t0) ** 2),
                                   jnp.mean((p1 - t1) ** 2)]))
    assert jnp.allclose(err_list, ref_list, rtol=1e-5, atol=1e-5)

    # 2) List case with explicit per-element weights.
    wts = jnp.array([0.3, 0.7], jnp.float32)
    err_listw = jax.block_until_ready(
        base_loss_forward([p0, p1], [t0, t1], weight=wts))
    ref_listw = jnp.mean(jnp.stack([jnp.mean(0.3 * (p0 - t0) ** 2),
                                    jnp.mean(0.7 * (p1 - t1) ** 2)]))
    assert jnp.allclose(err_listw, ref_listw, rtol=1e-5, atol=1e-5)

    # 3) Single-tensor case with explicit weight.
    err_single = jax.block_until_ready(
        base_loss_forward(p0, t0, weight=jnp.array([0.5], jnp.float32)))
    ref_single = jnp.mean(0.5 * (p0 - t0) ** 2)
    assert jnp.allclose(err_single, ref_single, rtol=1e-5, atol=1e-5)

    # 4) Non-lane-aligned element count (exercises the small pad + mask path).
    shp_odd = (2, 3, 5, 7)
    p_odd = jax.random.normal(k5, shp_odd, dtype=jnp.float32)
    t_odd = jax.random.normal(k6, shp_odd, dtype=jnp.float32)
    err_odd = jax.block_until_ready(base_loss_forward(p_odd, t_odd))
    ref_odd = jnp.mean((p_odd - t_odd) ** 2)
    assert jnp.allclose(err_odd, ref_odd, rtol=1e-5, atol=1e-5)

    # 5) List with differently-shaped elements (per-element calls handle it).
    err_mix = jax.block_until_ready(base_loss_forward([p0, p_odd], [t0, t_odd]))
    ref_mix = jnp.mean(jnp.stack([jnp.mean((p0 - t0) ** 2),
                                  jnp.mean((p_odd - t_odd) ** 2)]))
    assert jnp.allclose(err_mix, ref_mix, rtol=1e-5, atol=1e-5)

    print("KERNEL_OK")
</pallas_src>

<mosaic_0001>
module attributes {stable_mosaic.version = 11 : i64} {
  func.func @_wsse_kernel(%arg0: i32, %arg1: memref<1xf32, #tpu.memory_space<smem>>, %arg2: memref<16x128xf32, #tpu.memory_space<vmem>>, %arg3: memref<16x128xf32, #tpu.memory_space<vmem>>, %arg4: memref<8x128xf32, #tpu.memory_space<vmem>>, %arg5: memref<8x128xf32, #tpu.memory_space<vmem>>) attributes {dimension_semantics = [#tpu.dimension_semantics<arbitrary>], iteration_bounds = array<i64: 1>, scalar_prefetch = 0 : i64, scratch_operands = 1 : i64, tpu.core_type = #tpu.core_type<tc>, window_params = [{transform_indices = @transform_0, window_bounds = array<i64: 1>}, {transform_indices = @transform_1, window_bounds = array<i64: 16, 128>}, {transform_indices = @transform_2, window_bounds = array<i64: 16, 128>}, {pipeline_mode = #tpu.pipeline_mode<synchronous>, transform_indices = @transform_3, window_bounds = array<i64: 8, 128>}]} {
    %c0_i32 = arith.constant 0 : i32
    %0 = arith.cmpi eq, %arg0, %c0_i32 : i32
    %1 = arith.extui %0 : i1 to i32
    %c0_i32_0 = arith.constant 0 : i32
    %2 = arith.cmpi ne, %1, %c0_i32_0 : i32
    scf.if %2 {
      %cst_10 = arith.constant 0.000000e+00 : f32
      %15 = vector.broadcast %cst_10 : f32 to vector<8x128xf32>
      %c0_11 = arith.constant 0 : index
      %c0_12 = arith.constant 0 : index
      %16 = vector.load %arg5[%c0_11, %c0_12] : memref<8x128xf32, #tpu.memory_space<vmem>>, vector<8x128xf32>
      tpu.vector_store %arg5[%c0_11, %c0_12], %15 {strides = array<i32>} : memref<8x128xf32, #tpu.memory_space<vmem>>, vector<8x128xf32>,
    } else {
    }
    %c0 = arith.constant 0 : index
    %c0_1 = arith.constant 0 : index
    %3 = vector.load %arg2[%c0, %c0_1] : memref<16x128xf32, #tpu.memory_space<vmem>>, vector<16x128xf32>
    %c0_2 = arith.constant 0 : index
    %c0_3 = arith.constant 0 : index
    %4 = vector.load %arg3[%c0_2, %c0_3] : memref<16x128xf32, #tpu.memory_space<vmem>>, vector<16x128xf32>
    %5 = arith.subf %3, %4 : vector<16x128xf32>
    %6 = arith.mulf %5, %5 : vector<16x128xf32>
    %c0_4 = arith.constant 0 : index
    %c0_5 = arith.constant 0 : index
    %7 = vector.load %arg5[%c0_4, %c0_5] : memref<8x128xf32, #tpu.memory_space<vmem>>, vector<8x128xf32>
    %8 = vector.shape_cast %6 : vector<16x128xf32> to vector<2x8x128xf32>
    %cst = arith.constant dense<0.000000e+00> : vector<8x128xf32>
    %9 = vector.multi_reduction <add>, %8, %cst [0] : vector<2x8x128xf32> to vector<8x128xf32>
    %10 = arith.addf %7, %9 : vector<8x128xf32>
    %c0_6 = arith.constant 0 : index
    %c0_7 = arith.constant 0 : index
    %11 = vector.load %arg5[%c0_6, %c0_7] : memref<8x128xf32, #tpu.memory_space<vmem>>, vector<8x128xf32>
    tpu.vector_store %arg5[%c0_6, %c0_7], %10 {strides = array<i32>} : memref<8x128xf32, #tpu.memory_space<vmem>>, vector<8x128xf32>,
    %c0_i32_8 = arith.constant 0 : i32
    %12 = arith.cmpi eq, %arg0, %c0_i32_8 : i32
    %13 = arith.extui %12 : i1 to i32
    %c0_i32_9 = arith.constant 0 : i32
    %14 = arith.cmpi ne, %13, %c0_i32_9 : i32
    scf.if %14 {
      %c0_10 = arith.constant 0 : index
      %c0_11 = arith.constant 0 : index
      %15 = vector.load %arg5[%c0_10, %c0_11] : memref<8x128xf32, #tpu.memory_space<vmem>>, vector<8x128xf32>
      %16 = vector.shape_cast %15 : vector<8x128xf32> to vector<1x8x128xf32>
      %cst_12 = arith.constant dense<0.000000e+00> : vector<1xf32>
      %17 = vector.multi_reduction <add>, %16, %cst_12 [1, 2] : vector<1x8x128xf32> to vector<1xf32>
      %18 = vector.shape_cast %17 : vector<1xf32> to vector<1x1x1xf32>
      %19 = vector.extract %18[0, 0, 0] : f32 from vector<1x1x1xf32>
      %c0_13 = arith.constant 0 : index
      %20 = memref.load %arg1[%c0_13] : memref<1xf32, #tpu.memory_space<smem>>
      %21 = arith.mulf %19, %20 : f32
      %cst_14 = arith.constant 4.8828125E-4 : f32
      %22 = arith.mulf %21, %cst_14 : f32
      %23 = vector.broadcast %22 : f32 to vector<8x128xf32>
      %c0_15 = arith.constant 0 : index
      %c0_16 = arith.constant 0 : index
      %24 = vector.load %arg4[%c0_15, %c0_16] : memref<8x128xf32, #tpu.memory_space<vmem>>, vector<8x128xf32>
      tpu.vector_store %arg4[%c0_15, %c0_16], %23 {strides = array<i32>} : memref<8x128xf32, #tpu.memory_space<vmem>>, vector<8x128xf32>,
    } else {
    }
    return
  }
  func.func @transform_0(%arg0: i32) -> i32 {
    %c0_i32 = arith.constant 0 : i32
    %c0_i32_0 = arith.constant 0 : i32
    return %c0_i32 : i32
  }
  func.func @transform_1(%arg0: i32) -> (i32, i32) {
    %c0_i32 = arith.constant 0 : i32
    %c0_i32_0 = arith.constant 0 : i32
    return %arg0, %c0_i32 : i32, i32
  }
  func.func @transform_2(%arg0: i32) -> (i32, i32) {
    %c0_i32 = arith.constant 0 : i32
    %c0_i32_0 = arith.constant 0 : i32
    return %arg0, %c0_i32 : i32, i32
  }
  func.func @transform_3(%arg0: i32) -> (i32, i32) {
    %c0_i32 = arith.constant 0 : i32
    %c0_i32_0 = arith.constant 0 : i32
    %c0_i32_1 = arith.constant 0 : i32
    return %c0_i32, %c0_i32_0 : i32, i32
  }
}

</mosaic_0001>

<bundles_post_ra>
// kernel: tpu_custom_call.1
= control target key start
LH: loop header
LB: loop body
LE: loop exit
PB: predicated region body
PF: predicated region fallthrough
CT: control target
= control target key end

     0   :  { %9 = vsyncpa [#allocation5], 0  ;;  %s205_s0 = inlined_call_operand.<no memory space> [shape: f32[1], index: 0, kind: input, shape index: {}]   ;;  %s206_s1 = inlined_call_operand.hbm [shape: f32[16,128], index: 1, kind: input, shape index: {}]   ;;  %s207_s2 = inlined_call_operand.hbm [shape: f32[16,128], index: 2, kind: input, shape index: {}]   ;;  %s208_s3 = inlined_call_operand.hbm [shape: f32[8,128], index: 3, kind: output, shape index: {}]  }
   0x1   :  { %10 = vsyncpa [#allocation8], 0 }
   0x2   :  { %11 = vsyncpa [#allocation6], 0  ;;  %s168_s12 = smov [#allocation4]  }
   0x3   :  { %s19_s13 = sshll.u32 %s168_s12, 4  ;;  %s20_s13 = int_to_ptr.vmem [resolvable:$true] %s19_s13 }
   0x4   :  { %s110_s14 = scalar_lea.vmem %s20_s13, 256  ;;  %p115_p1 = scmp.lt.s32.totalorder %s20_s13, %s20_s13 }
   0x5   :  { %p111_p0 = scmp.ne.s32.totalorder %s20_s13, %s110_s14  ;;  %p116_p2 = scmp.lt.s32.totalorder %s110_s14, %s110_s14 }
   0x7   :  { %p117_p3 = por %p116_p2, %p115_p1 }
   0x9   :  { %p118_p4 = pnand %p117_p3, %p111_p0 }
   0xb   :  { %121 = shalt.err (!%p118_p4)
}
   0xc   :  { %s169_s15 = smov 128   ;;  %s170_s16 = smov 8  }
   0xd   :  { %25 = dma.hbm_to_vmem [thread:$0]  %s206_s1, 256, %s20_s13, [#allocation5], %s169_s15, %s169_s15, %s170_s16  }
   0xe   :  { %s171_s19 = smov [#allocation7]  }
   0xf   :  { %s31_s20 = sshll.u32 %s171_s19, 4  ;;  %s32_s20 = int_to_ptr.vmem [resolvable:$true] %s31_s20 }
  0x10   :  { %s130_s21 = scalar_lea.vmem %s32_s20, 256  ;;  %p135_p6 = scmp.lt.s32.totalorder %s32_s20, %s32_s20 }
  0x11   :  { %p131_p5 = scmp.ne.s32.totalorder %s32_s20, %s130_s21  ;;  %p136_p7 = scmp.lt.s32.totalorder %s130_s21, %s130_s21 }
  0x13   :  { %p137_p8 = por %p136_p7, %p135_p6 }
  0x15   :  { %p138_p9 = pnand %p137_p8, %p131_p5 }
  0x17   :  { %141 = shalt.err (!%p138_p9)
}
  0x18   :  { %37 = dma.hbm_to_vmem [thread:$0]  %s207_s2, 256, %s32_s20, [#allocation8], %s169_s15, %s169_s15, %s170_s16  }
  0x19   :  { %162 = dma.done.wait [#allocation5], 256  }
  0x1a   :  { %163 = vsyncadd [#allocation5], 4294967040 }
  0x1b   :  { %164 = dma.done.wait [#allocation8], 256  }
  0x1c   :  { %165 = vsyncadd [#allocation8], 4294967040  ;;  %v49_v0 = vld [vmem:[#allocation4] sm:$0xff]  ;;  %v50_v1 = vld [vmem:[#allocation4 + $0x8] sm:$0xff]  ;;  %s172_s26 = smov [#allocation9]  }
  0x1d   :  { %v51_v2 = vld [vmem:[#allocation7] sm:$0xff]  ;;  %v52_v3 = vld [vmem:[#allocation7 + $0x8] sm:$0xff]  ;;  %s85_s27 = sshll.u32 %s172_s26, 4  ;;  %s86_s27 = int_to_ptr.vmem [resolvable:$true] %s85_s27 }
  0x1e   :  { %v53_v4 = vsub.f32 %v49_v0, %v51_v2  ;;  %v54_v5 = vsub.f32 %v50_v1, %v52_v3  ;;  %s142_s29 = scalar_lea.vmem %s86_s27, 128  ;;  %p147_p11 = scmp.lt.s32.totalorder %s86_s27, %s86_s27 }
  0x1f   :  { %p143_p10 = scmp.ne.s32.totalorder %s86_s27, %s142_s29  ;;  %p148_p12 = scmp.lt.s32.totalorder %s142_s29, %s142_s29 }
  0x20   :  { %v55_v6 = vmul.f32 %v53_v4, %v53_v4  ;;  %v56_v7 = vmul.f32 %v54_v5, %v54_v5 }
  0x21   :  { %p149_p13 = por %p148_p12, %p147_p11 }
  0x22   :  { %v58_v8 = vadd.f32 %v56_v7, %v55_v6 }
  0x23   :  { %p150_p0 = pnand %p149_p13, %p143_p10 }
  0x24   :  { %65 = vadd.xlane.f32.xlu0 %v58_v8 }
  0xad   :  { %v66_v9 = vpop.xlane.xlu0 %65 }
  0xae   :  { %v67_v10 = vrot.slane %v66_v9, 4 }
  0xb0   :  { %v68_v11 = vadd.f32 %v67_v10, %v66_v9 }
  0xb2   :  { %v69_v12 = vrot.slane %v68_v11, 2 }
  0xb4   :  { %v70_v13 = vadd.f32 %v69_v12, %v68_v11 }
  0xb6   :  { %v71_v14 = vrot.slane %v70_v13, 1 }
  0xb8   :  { %v72_v15 = vadd.f32 %v71_v14, %v70_v13 }
  0xba   :  { %95 = vpush %v72_v15 }
  0xeb   :  { %s96_s1 = spop %95 }
  0xec   :  { %s75_s25 = smul.f32 %s96_s1, %s205_s0 }
  0xee   :  { %s76_s28 = smul.f32 0.00048828125, %s75_s25 }
  0xf0   :  { %v77_v16 = vstv %s76_s28 }
  0xf1   :  { %78 = vst [vmem:[#allocation9] sm:$0xff] %v77_v16 }
  0xf2   :  { %153 = shalt.err (!%p150_p0)
}
  0xf3   :  { %88 = dma.vmem_to_hbm [thread:$0]  %s86_s27, 128, %s208_s3, [#allocation6]  }
  0xf4   :  { %166 = dma.done.wait [#allocation6], 128  }
  0xf5   :  { %167 = vsyncadd [#allocation6], 4294967168 }
  0xf6   :  { %92 = vsyncpa [#allocation5], 1 }
  0xf7   :  { %93 = vsyncpa [#allocation8], 1 }
  0xf8   :  { %94 = vsyncpa [#allocation6], 1 }

</bundles_post_ra>
